<compile_context>
chip_gen: v7x
topology: tpu7x:2x2x1
jax: 0.10.0
libtpu: 0.0.40
codegen_flags: <defaults>
</compile_context>

<pallas_src>
import functools

import jax
import jax.numpy as jnp
from jax.experimental import pallas as pl
from jax.experimental.pallas import tpu as pltpu


def baseline_kernel(xt_ref, w1_ref, b1_ref, w2_ref, b2_ref, o_ref):
    # Layer 1 (transposed): h^T = relu(W1 @ x^T + b1)   -> (n_hidden, tb)
    h = jnp.dot(w1_ref[...], xt_ref[...], preferred_element_type=jnp.float32)
    h = jnp.maximum(h + b1_ref[...], 0.0)
    # Layer 2 (transposed): y^T = W2 @ h^T + b2          -> (out_pad, tb)
    y = jnp.dot(w2_ref[...], h.astype(jnp.bfloat16),
                preferred_element_type=jnp.float32)
    o_ref[...] = (y + b2_ref[...]).astype(o_ref.dtype)


def _is_v7x():
    try:
        kind = jax.devices()[0].device_kind.lower()
    except Exception:
        return False
    return "7" in kind


def _auto_grid_steps(batch):
    # One grid step per TensorCore: 2 on v7x (megacore), 1 on v5e/v6e.
    steps = 2 if _is_v7x() else 1
    if batch < 256:
        steps = 1                       # don't split tiny batches across cores
    # Keep per-step tiles comfortably inside scoped VMEM for very large batches.
    steps = max(steps, -(-batch // 16384))
    return steps


@functools.partial(jax.jit, static_argnames=("grid_steps",))
def _baseline_forward_impl(x, w1, b1, w2, b2, *, grid_steps):
    B, n_input = x.shape
    n_hidden = w1.shape[0]
    n_output = w2.shape[0]

    # --- batch (lane axis) padding: multiple of 128 * grid_steps -------------
    lane_align = 128 * grid_steps
    bp = pl.cdiv(B, lane_align) * lane_align
    tb = bp // grid_steps
    if bp != B:
        x = jnp.pad(x, ((0, bp - B), (0, 0)))

    # x^T, cast to bf16 as part of the same wrapper pass (no standalone cast).
    xt = x.T.astype(jnp.bfloat16)                        # (n_input, bp)

    # --- parameters, PyTorch-native (out, in) == transposed layout -----------
    out_pad = max(8, pl.cdiv(n_output, 8) * 8)           # sublane-aligned output rows
    w1_bf = w1.astype(jnp.bfloat16)                      # (n_hidden, n_input)
    b1_c = b1.reshape(n_hidden, 1).astype(jnp.float32)   # (n_hidden, 1)
    w2_bf = (jnp.zeros((out_pad, n_hidden), jnp.float32)
             .at[:n_output].set(w2)).astype(jnp.bfloat16)
    b2_c = (jnp.zeros((out_pad, 1), jnp.float32)
            .at[:n_output, 0].set(b2.reshape(-1)))

    out_t = pl.pallas_call(
        baseline_kernel,
        out_shape=jax.ShapeDtypeStruct((out_pad, bp), jnp.float32),
        grid_spec=pltpu.PrefetchScalarGridSpec(
            num_scalar_prefetch=0,
            grid=(grid_steps,),
            in_specs=[
                pl.BlockSpec((n_input, tb), lambda i: (0, i)),        # x^T tile
                pl.BlockSpec((n_hidden, n_input), lambda i: (0, 0)),  # W1 (resident)
                pl.BlockSpec((n_hidden, 1), lambda i: (0, 0)),        # b1 (resident)
                pl.BlockSpec((out_pad, n_hidden), lambda i: (0, 0)),  # W2 (resident)
                pl.BlockSpec((out_pad, 1), lambda i: (0, 0)),         # b2 (resident)
            ],
            out_specs=pl.BlockSpec((out_pad, tb), lambda i: (0, i)),
        ),
        compiler_params=pltpu.CompilerParams(
            dimension_semantics=("parallel",),   # megacore sharding on v7x
        ),
        cost_estimate=pl.CostEstimate(
            flops=2 * bp * (n_input * n_hidden + n_hidden * out_pad),
            transcendentals=0,
            bytes_accessed=(xt.size * 2 + out_pad * bp * 4
                            + (w1_bf.size + w2_bf.size) * 2
                            + (b1_c.size + b2_c.size) * 4),
        ),
    )(xt, w1_bf, b1_c, w2_bf, b2_c)

    # y = (y^T)^T, dropping output-row and batch padding.
    return out_t[:n_output, :B].T


def baseline_forward(x, w1, b1, w2, b2, *, grid_steps=None):
    """Forward pass of `Baseline`.

    x:  (B, n_input) f32
    w1: (n_hidden, n_input) f32   (PyTorch fc1.weight layout)
    b1: (n_hidden,) f32
    w2: (n_output, n_hidden) f32  (PyTorch fc2.weight layout)
    b2: (n_output,) f32
    Returns (B, n_output) f32 = relu(x @ w1^T + b1) @ w2^T + b2.
    """
    if grid_steps is None:
        grid_steps = _auto_grid_steps(int(x.shape[0]))
    return _baseline_forward_impl(x, w1, b1, w2, b2, grid_steps=grid_steps)


def init_params(key, n_input, n_hidden, n_output):
    """PyTorch-layout params, nn.Linear-style U(-1/sqrt(fan_in), 1/sqrt(fan_in)) init."""
    k1, k2, k3, k4 = jax.random.split(key, 4)
    bound1 = 1.0 / jnp.sqrt(jnp.float32(n_input))
    bound2 = 1.0 / jnp.sqrt(jnp.float32(n_hidden))
    w1 = jax.random.uniform(k1, (n_hidden, n_input), jnp.float32, -bound1, bound1)
    b1 = jax.random.uniform(k2, (n_hidden,), jnp.float32, -bound1, bound1)
    w2 = jax.random.uniform(k3, (n_output, n_hidden), jnp.float32, -bound2, bound2)
    b2 = jax.random.uniform(k4, (n_output,), jnp.float32, -bound2, bound2)
    return w1, b1, w2, b2


def reference_forward_bf16(x, w1, b1, w2, b2):
    """Same math path as the kernel: bf16 MXU inputs, f32 accumulate/elementwise."""
    h = jnp.dot(x.astype(jnp.bfloat16), w1.T.astype(jnp.bfloat16),
                preferred_element_type=jnp.float32) + b1
    h = jnp.maximum(h, 0.0)
    return jnp.dot(h.astype(jnp.bfloat16), w2.T.astype(jnp.bfloat16),
                   preferred_element_type=jnp.float32) + b2


def reference_forward_f32(x, w1, b1, w2, b2):
    h = jnp.maximum(x @ w1.T + b1, 0.0)
    return h @ w2.T + b2


# TODO(synk): train_baseline (MSE loss backward + optimizer step) is a training
# path and is intentionally not implemented as a Pallas kernel.

if __name__ == "__main__":
    # CliffWalking-style sizes: 48 states (4x12 grid, one-hot), scalar value head.
    B, n_input, n_hidden, n_output = 256, 48, 32, 1

    key = jax.random.PRNGKey(0)
    kx, kp = jax.random.split(key)
    x = jax.random.normal(kx, (B, n_input), jnp.float32)
    w1, b1, w2, b2 = init_params(kp, n_input, n_hidden, n_output)

    out = baseline_forward(x, w1, b1, w2, b2)
    out = jax.block_until_ready(out)
    assert out.shape == (B, n_output), out.shape

    # Tight check against a reference using the same bf16-in / f32-accumulate dots.
    ref_bf = reference_forward_bf16(x, w1, b1, w2, b2)
    assert jnp.allclose(out, ref_bf, atol=2e-4, rtol=2e-4), (
        float(jnp.max(jnp.abs(out - ref_bf))))

    # Looser sanity check against pure-f32 PyTorch-equivalent math.
    ref_f32 = reference_forward_f32(x, w1, b1, w2, b2)
    assert jnp.allclose(out, ref_f32, atol=5e-2, rtol=5e-2), (
        float(jnp.max(jnp.abs(out - ref_f32))))

    print("KERNEL_OK")
</pallas_src>

<mosaic_0001>
module attributes {stable_mosaic.version = 11 : i64} {
  func.func @baseline_kernel(%arg0: i32, %arg1: memref<48x256xbf16, #tpu.memory_space<vmem>>, %arg2: memref<32x48xbf16, #tpu.memory_space<vmem>>, %arg3: memref<32x1xf32, #tpu.memory_space<vmem>>, %arg4: memref<8x32xbf16, #tpu.memory_space<vmem>>, %arg5: memref<8x1xf32, #tpu.memory_space<vmem>>, %arg6: memref<8x256xf32, #tpu.memory_space<vmem>>) attributes {dimension_semantics = [#tpu.dimension_semantics<parallel>], iteration_bounds = array<i64: 1>, scalar_prefetch = 0 : i64, scratch_operands = 0 : i64, tpu.core_type = #tpu.core_type<tc>, window_params = [{transform_indices = @transform_0, window_bounds = array<i64: 48, 256>}, {pipeline_mode = #tpu.pipeline_mode<synchronous>, transform_indices = @transform_1, window_bounds = array<i64: 32, 48>}, {pipeline_mode = #tpu.pipeline_mode<synchronous>, transform_indices = @transform_2, window_bounds = array<i64: 32, 1>}, {pipeline_mode = #tpu.pipeline_mode<synchronous>, transform_indices = @transform_3, window_bounds = array<i64: 8, 32>}, {pipeline_mode = #tpu.pipeline_mode<synchronous>, transform_indices = @transform_4, window_bounds = array<i64: 8, 1>}, {transform_indices = @transform_5, window_bounds = array<i64: 8, 256>}]} {
    %c0 = arith.constant 0 : index
    %c0_0 = arith.constant 0 : index
    %0 = vector.load %arg2[%c0, %c0_0] : memref<32x48xbf16, #tpu.memory_space<vmem>>, vector<32x48xbf16>
    %c0_1 = arith.constant 0 : index
    %c0_2 = arith.constant 0 : index
    %1 = vector.load %arg1[%c0_1, %c0_2] : memref<48x256xbf16, #tpu.memory_space<vmem>>, vector<48x256xbf16>
    %cst = arith.constant dense<0.000000e+00> : vector<32x256xf32>
    %2 = tpu.matmul %0, %1, %cst {dimension_numbers = #tpu.dot_dimension_numbers<[1], [0], [0], [1], [0, 0, 1, 1], [], []>} : vector<32x48xbf16>, vector<48x256xbf16>, vector<32x256xf32> -> vector<32x256xf32>
    %c0_3 = arith.constant 0 : index
    %c0_4 = arith.constant 0 : index
    %3 = vector.load %arg3[%c0_3, %c0_4] : memref<32x1xf32, #tpu.memory_space<vmem>>, vector<32x1xf32>
    %4 = vector.broadcast %3 : vector<32x1xf32> to vector<32x256xf32>
    %5 = arith.addf %2, %4 : vector<32x256xf32>
    %cst_5 = arith.constant 0.000000e+00 : f32
    %6 = vector.broadcast %cst_5 : f32 to vector<32x256xf32>
    %7 = arith.maximumf %5, %6 : vector<32x256xf32>
    %c0_6 = arith.constant 0 : index
    %c0_7 = arith.constant 0 : index
    %8 = vector.load %arg4[%c0_6, %c0_7] : memref<8x32xbf16, #tpu.memory_space<vmem>>, vector<8x32xbf16>
    %9 = arith.truncf %7 : vector<32x256xf32> to vector<32x256xbf16>
    %cst_8 = arith.constant dense<0.000000e+00> : vector<8x256xf32>
    %10 = tpu.matmul %8, %9, %cst_8 {dimension_numbers = #tpu.dot_dimension_numbers<[1], [0], [0], [1], [0, 0, 1, 1], [], []>} : vector<8x32xbf16>, vector<32x256xbf16>, vector<8x256xf32> -> vector<8x256xf32>
    %c0_9 = arith.constant 0 : index
    %c0_10 = arith.constant 0 : index
    %11 = vector.load %arg5[%c0_9, %c0_10] : memref<8x1xf32, #tpu.memory_space<vmem>>, vector<8x1xf32>
    %12 = vector.broadcast %11 : vector<8x1xf32> to vector<8x256xf32>
    %13 = arith.addf %10, %12 : vector<8x256xf32>
    %c0_11 = arith.constant 0 : index
    %c0_12 = arith.constant 0 : index
    %14 = vector.load %arg6[%c0_11, %c0_12] : memref<8x256xf32, #tpu.memory_space<vmem>>, vector<8x256xf32>
    tpu.vector_store %arg6[%c0_11, %c0_12], %13 {strides = array<i32>} : memref<8x256xf32, #tpu.memory_space<vmem>>, vector<8x256xf32>,
    return
  }
  func.func @transform_0(%arg0: i32) -> (i32, i32) {
    %c0_i32 = arith.constant 0 : i32
    %c0_i32_0 = arith.constant 0 : i32
    return %c0_i32, %arg0 : i32, i32
  }
  func.func @transform_1(%arg0: i32) -> (i32, i32) {
    %c0_i32 = arith.constant 0 : i32
    %c0_i32_0 = arith.constant 0 : i32
    %c0_i32_1 = arith.constant 0 : i32
    return %c0_i32, %c0_i32_0 : i32, i32
  }
  func.func @transform_2(%arg0: i32) -> (i32, i32) {
    %c0_i32 = arith.constant 0 : i32
    %c0_i32_0 = arith.constant 0 : i32
    %c0_i32_1 = arith.constant 0 : i32
    return %c0_i32, %c0_i32_0 : i32, i32
  }
  func.func @transform_3(%arg0: i32) -> (i32, i32) {
    %c0_i32 = arith.constant 0 : i32
    %c0_i32_0 = arith.constant 0 : i32
    %c0_i32_1 = arith.constant 0 : i32
    return %c0_i32, %c0_i32_0 : i32, i32
  }
  func.func @transform_4(%arg0: i32) -> (i32, i32) {
    %c0_i32 = arith.constant 0 : i32
    %c0_i32_0 = arith.constant 0 : i32
    %c0_i32_1 = arith.constant 0 : i32
    return %c0_i32, %c0_i32_0 : i32, i32
  }
  func.func @transform_5(%arg0: i32) -> (i32, i32) {
    %c0_i32 = arith.constant 0 : i32
    %c0_i32_0 = arith.constant 0 : i32
    return %c0_i32, %arg0 : i32, i32
  }
}

</mosaic_0001>

<bundles_post_ra>
// kernel: _baseline_forward_impl.1
= control target key start
LH: loop header
LB: loop body
LE: loop exit
PB: predicated region body
PF: predicated region fallthrough
CT: control target
= control target key end

     0   :  { %v250_v1 = vmov 0   ;;  %vm95_vm0 = vcmask 392192   ;;  %vm174_vm1 = vcmask 261120   ;;  %s329_s0 = inlined_call_operand.vmem [shape: bf16[48,256], index: 0, kind: input, shape index: {}]   ;;  %s330_s1 = inlined_call_operand.vmem [shape: bf16[32,48], index: 1, kind: input, shape index: {}]   ;;  %s331_s2 = inlined_call_operand.vmem [shape: f32[32,1], index: 2, kind: input, shape index: {}]   ;;  %s332_s4 = inlined_call_operand.vmem [shape: f32[8,1], index: 4, kind: input, shape index: {}]   ;;  %s333_s3 = inlined_call_operand.vmem [shape: bf16[8,32], index: 3, kind: input, shape index: {}]   ;;  %s334_s5 = inlined_call_operand.vmem [shape: f32[8,256], index: 5, kind: output, shape index: {}]  }
   0x1   :  { %v239_v0 = vld [vmem:[%s329_s0 + $0x4] ss:$8 sps:$4 sm:$0xff]   ;;  %134 = vmatprep.mubr.bf16.mxu0 %v250_v1  ;;  %237 = vset.pattern.permute.xlu0 %v250_v1  ;;  %v241_v2 = vld [vmem:[%s329_s0] ss:$8 sps:$4 sm:$0xff]   ;;  %v242_v3 = vld [vmem:[%s329_s0 + $0x14] ss:$8 sps:$4 sm:$0xff]  }
   0x2   :  { %238 = vset.pattern.permute.xlu1 %v250_v1  ;;  %210 = vmatprep.mubr.bf16.mxu1 %v250_v1  ;;  %v244_v4 = vld [vmem:[%s329_s0 + $0x10] ss:$8 sps:$4 sm:$0xff]   ;;  %v245_v5 = vld [vmem:[%s329_s0 + $0x24] ss:$8 sps:$4 sm:$0xff]   ;;  %v247_v8 = vld [vmem:[%s329_s0 + $0x20] ss:$8 sps:$4 sm:$0xff]  }
   0x3   :  { %102 = vmatprep.subr.bf16.mxu0 %v239_v0  ;;  %v31_v6 = vld [vmem:[%s331_s2] sm:$0xff]  ;;  %v33_v7 = vld [vmem:[%s331_s2 + $0x10] sm:$0xff]  ;;  %v32_v9 = vld [vmem:[%s331_s2 + $0x8] sm:$0xff] }
   0x4   :  { %103 = vmatpush1.bf16.msra.mxu0 %v241_v2  ;;  %37 = vperm.xlu0 %237, %v31_v6   ;;  %v34_v10 = vld [vmem:[%s331_s2 + $0x18] sm:$0xff]  ;;  %v248_v11 = vld [vmem:[%s330_s1] sm:$0xff]   ;;  %v249_v13 = vld [vmem:[%s330_s1 + $0x8] sm:$0xff]  }
   0x5   :  { %104 = vmatprep.subr.bf16.mxu0 %v242_v3  ;;  %47 = vperm.xlu1 %238, %v33_v7   ;;  %v168_v12 = vld [vmem:[%s332_s4] sm:$0xff] }
   0x6   :  { %v163_v46 = vld [vmem:[%s333_s3] sm:$0xf] }
   0x8   :  { %105 = vmatpush1.bf16.msra.mxu0 %v244_v4  ;;  %42 = vperm.xlu0 %237, %v32_v9  }
   0x9   :  { %106 = vmatprep.subr.bf16.mxu0 %v245_v5  ;;  %52 = vperm.xlu1 %238, %v34_v10  }
   0xc   :  { %107 = vmatpush1.bf16.msra.mxu0 %v247_v8  ;;  %171 = vperm.xlu0 %237, %v168_v12  }
   0xf   :  { %233 = vmatmul.mubr.msk.bf16.vlgmr.msra.gmra.mrb[0].mxu0 %vm95_vm0, %v248_v11 }
  0x10   :  { %144 = vmatprep.mubr.bf16.mxu0 %v250_v1 }
  0x17   :  { %234 = vmatmul.mubr.msk.bf16.gmra.mrb[4].mxu0 %vm95_vm0, %v249_v13 }
  0x83   :  { %v38_v14 = vpop.permute.xlu0 %37 }
  0x84   :  { %v48_v23 = vpop.permute.xlu1 %47 }
  0x87   :  { %v43_v18 = vpop.permute.xlu0 %42 }
  0x88   :  { %v53_v34 = vpop.permute.xlu1 %52 }
  0x8b   :  { %v172_v47 = vpop.permute.xlu0 %171 }
  0xe2   :  { %v136_v15 = vpop.f32.mrb[0].mxu0 }
  0xe3   :  { %v137_v16 = vadd.f32 %v136_v15, %v38_v14  ;;  %v138_v17 = vpop.f32.mrb[1].mxu0 }
  0xe4   :  { %v139_v19 = vadd.f32 %v138_v17, %v38_v14  ;;  %v140_v20 = vpop.f32.mrb[2].mxu0 }
  0xe5   :  { %v141_v21 = vadd.f32 %v140_v20, %v43_v18  ;;  %v142_v22 = vpop.f32.mrb[3].mxu0  ;;  %v155_v25 = vmax.f32 %v137_v16, 0.0 }
  0xe6   :  { %v143_v24 = vadd.f32 %v142_v22, %v43_v18  ;;  %v156_v27 = vmax.f32 %v139_v19, 0.0 }
  0xe7   :  { %v157_v26 = vmax.f32 %v141_v21, 0.0 }
  0xe8   :  { %v158_v28 = vmax.f32 %v143_v24, 0.0 }
  0xe9   :  { %v164_v29 = vpack.c.bf16 %v157_v26, %v155_v25 }
  0xea   :  { %v146_v30 = vpop.f32.mrb[4].mxu0  ;;  %v165_v31 = vpack.c.bf16 %v158_v28, %v156_v27 }
  0xeb   :  { %v147_v32 = vadd.f32 %v146_v30, %v48_v23  ;;  %v148_v33 = vpop.f32.mrb[5].mxu0 }
  0xec   :  { %v149_v35 = vadd.f32 %v148_v33, %v48_v23  ;;  %v150_v36 = vpop.f32.mrb[6].mxu0  ;;  %178 = vmatprep.subr.bf16.mxu1 %v165_v31 }
  0xed   :  { %v151_v37 = vadd.f32 %v150_v36, %v53_v34  ;;  %v152_v38 = vpop.f32.mrb[7].mxu0  ;;  %179 = vmatpush1.bf16.msra.mxu1 %v164_v29  ;;  %v159_v40 = vmax.f32 %v147_v32, 0.0 }
  0xee   :  { %v153_v39 = vadd.f32 %v152_v38, %v53_v34  ;;  %v160_v42 = vmax.f32 %v149_v35, 0.0 }
  0xef   :  { %v161_v41 = vmax.f32 %v151_v37, 0.0 }
  0xf0   :  { %v162_v43 = vmax.f32 %v153_v39, 0.0 }
  0xf1   :  { %v166_v44 = vpack.c.bf16 %v161_v41, %v159_v40 }
  0xf2   :  { %v167_v45 = vpack.c.bf16 %v162_v43, %v160_v42 }
  0xf4   :  { %180 = vmatprep.subr.bf16.mxu1 %v167_v45 }
  0xf5   :  { %181 = vmatpush1.bf16.msra.mxu1 %v166_v44 }
  0xf8   :  { %235 = vmatmul.mubr.msk.bf16.vlgmr.msra.gmra.mrb[0].mxu1 %vm174_vm1, %v163_v46 }
 0x1cb   :  { %v212_v48 = vpop.f32.mrb[0].mxu1 }
 0x1cc   :  { %v213_v49 = vadd.f32 %v212_v48, %v172_v47  ;;  %v214_v50 = vpop.f32.mrb[1].mxu1 }
 0x1cd   :  { %v215_v51 = vadd.f32 %v214_v50, %v172_v47  ;;  %v216_v52 = vpop.f32.mrb[2].mxu1 }
 0x1ce   :  { %219 = vst [vmem:[%s334_s5] sm:$0xff] %v213_v49  ;;  %v217_v53 = vpop.f32.mrb[3].mxu1 }
 0x1cf   :  { %220 = vst [vmem:[%s334_s5 + $0x8] sm:$0xff] %v215_v51 }

</bundles_post_ra>
